<compile_context>
chip_gen: v6e
topology: v6e:2x2x1
jax: 0.10.0
libtpu: 0.0.40
codegen_flags: <defaults>
</compile_context>

<pallas_src>
import functools

import jax
import jax.numpy as jnp
from jax.experimental import pallas as pl
from jax.experimental.pallas import tpu as pltpu


_LANE = 128
_SUBLANE_BF16 = 16


def _round_up(n, m):
    return ((n + m - 1) // m) * m


# ----------------------------------------------------------------------------
# Fused kernel (factory closes over the static number of hidden layers)
# ----------------------------------------------------------------------------
def _make_encoder_kernel(n_hidden):
    """Fused encoder kernel for one batch tile.

    Positional ref layout:
      x, (w_0, shift_0), ..., (w_{n-1}, shift_{n-1}), w_head, b_head, eps,
      z_mean_out, z_log_var_out, z_out
    """

    def kernel(*refs):
        x_ref = refs[0]
        idx = 1
        h = x_ref[...]                                  # bf16 activations
        # Hidden stack: Linear + folded eval-mode BatchNorm + ReLU (Dropout=id).
        for _ in range(n_hidden):
            w_ref, s_ref = refs[idx], refs[idx + 1]
            idx += 2
            acc = jnp.dot(h, w_ref[...], preferred_element_type=jnp.float32)
            acc = acc + s_ref[...]                      # f32 shift/bias
            h = jnp.maximum(acc, 0.0).astype(jnp.bfloat16)

        w_head_ref, b_head_ref, eps_ref = refs[idx], refs[idx + 1], refs[idx + 2]
        zm_ref, zv_ref, z_ref = refs[idx + 3], refs[idx + 4], refs[idx + 5]

        # Both latent heads in one MXU matmul: [Wm | Wv] -> (TB, 2 * Lp).
        heads = jnp.dot(h, w_head_ref[...], preferred_element_type=jnp.float32)
        heads = heads + b_head_ref[...]
        lp = heads.shape[1] // 2                        # lane-aligned split
        zm = heads[:, :lp]
        zv = heads[:, lp:]

        zm_ref[...] = zm
        zv_ref[...] = zv
        # Reparameterization trick: z = mean + exp(0.5 * log_var) * epsilon.
        # (eps could be generated in-kernel via pltpu.prng_*; kept as an input
        #  so the host-side reference check can use identical randomness.)
        z_ref[...] = zm + jnp.exp(0.5 * zv) * eps_ref[...]

    return kernel


# ----------------------------------------------------------------------------
# Forward wrapper: single fused pallas_call with a pipelined batch grid
# ----------------------------------------------------------------------------
@functools.partial(jax.jit, static_argnames=("latent_dim",))
def encoder_forward(params, x, eps, *, latent_dim):
    hidden = params["hidden"]
    w_head = params["w_head"]
    b_head = params["b_head"]

    d0_pad = hidden[0][0].shape[0] if hidden else w_head.shape[0]
    lp = w_head.shape[1] // 2                           # padded latent width

    B = x.shape[0]
    x_flat = x.reshape(B, -1).astype(jnp.float32)       # nn.Flatten
    d0_real = x_flat.shape[1]

    # Batch tile: fill the 256-row MXU on v6e/v7x when the batch allows it,
    # otherwise the smallest bf16-sublane-aligned tile covering the batch.
    TB = 256 if B >= 256 else _round_up(B, _SUBLANE_BF16)
    B_pad = _round_up(B, TB)
    grid = (B_pad // TB,)

    # Zero-pad batch rows and feature lanes (padding is exact: zero weight
    # rows / zero shift lanes keep padded lanes at zero through the network).
    x_p = jnp.zeros((B_pad, d0_pad), jnp.float32)
    x_p = x_p.at[:B, :d0_real].set(x_flat).astype(jnp.bfloat16)
    eps_p = jnp.zeros((B_pad, lp), jnp.float32).at[:B, :latent_dim].set(eps)

    inputs = [x_p]
    in_specs = [pl.BlockSpec((TB, d0_pad), lambda i: (i, 0))]
    for w, s in hidden:
        inputs += [w, s]
        # Same block index for every grid step -> weights stay VMEM-resident.
        in_specs += [
            pl.BlockSpec(w.shape, lambda i: (0, 0)),
            pl.BlockSpec(s.shape, lambda i: (0, 0)),
        ]
    inputs += [w_head, b_head, eps_p]
    in_specs += [
        pl.BlockSpec(w_head.shape, lambda i: (0, 0)),
        pl.BlockSpec(b_head.shape, lambda i: (0, 0)),
        pl.BlockSpec((TB, lp), lambda i: (i, 0)),
    ]

    out_shape = tuple(
        jax.ShapeDtypeStruct((B_pad, lp), jnp.float32) for _ in range(3)
    )
    out_specs = tuple(pl.BlockSpec((TB, lp), lambda i: (i, 0)) for _ in range(3))

    # --- cost estimate + VMEM budget (all static shape arithmetic) ---------
    flops = 0
    weight_bytes = 0
    for w, s in hidden:
        flops += 2 * B_pad * w.shape[0] * w.shape[1]
        weight_bytes += w.size * w.dtype.itemsize + s.size * s.dtype.itemsize
    flops += 2 * B_pad * w_head.shape[0] * w_head.shape[1]
    weight_bytes += (w_head.size * w_head.dtype.itemsize
                     + b_head.size * b_head.dtype.itemsize)
    io_bytes = (x_p.size * 2) + eps_p.size * 4 + 3 * B_pad * lp * 4
    cost = pl.CostEstimate(
        flops=flops,
        transcendentals=B_pad * lp,
        bytes_accessed=weight_bytes + io_bytes,
    )

    # Resident weights + double-buffered batch tiles (+ margin), never below
    # the default scoped limit, capped at v7x's 64 MiB per TensorCore.
    tile_bytes = 2 * (TB * d0_pad * 2 + TB * lp * 4 + 3 * TB * lp * 4)
    vmem_limit = min(
        64 * 1024 * 1024,
        max(32 * 1024 * 1024,
            int(1.25 * (weight_bytes + tile_bytes)) + (4 << 20)),
    )

    zm_p, zv_p, z_p = pl.pallas_call(
        _make_encoder_kernel(len(hidden)),
        grid=grid,
        out_shape=out_shape,
        in_specs=in_specs,
        out_specs=out_specs,
        compiler_params=pltpu.CompilerParams(
            dimension_semantics=("parallel",),
            vmem_limit_bytes=vmem_limit,
        ),
        cost_estimate=cost,
    )(*inputs)

    # Strip batch + lane padding back to true shapes.
    return (zm_p[:B, :latent_dim],
            zv_p[:B, :latent_dim],
            z_p[:B, :latent_dim])


# ----------------------------------------------------------------------------
# Raw parameters (mimic PyTorch defaults; eval-mode BN running stats)
# ----------------------------------------------------------------------------
def init_encoder_params(key, n_features, num_classes, latent_dim,
                        hidden_layer_sizes):
    params = {"hidden": [], "input_dim": n_features * num_classes}
    input_dim = n_features * num_classes
    bn_eps = 1e-5
    for h in hidden_layer_sizes:
        key, kw, kb, kg, kbeta = jax.random.split(key, 5)
        bound = 1.0 / float(input_dim) ** 0.5
        w = jax.random.uniform(kw, (input_dim, h), jnp.float32, -bound, bound)
        b = jax.random.uniform(kb, (1, h), jnp.float32, -bound, bound)
        # BatchNorm1d params + running stats (eval mode)
        gamma = jax.random.uniform(kg, (h,), jnp.float32, 0.5, 1.5)
        beta = jax.random.uniform(kbeta, (h,), jnp.float32, -0.1, 0.1)
        running_mean = jnp.zeros((h,), jnp.float32)
        running_var = jnp.ones((h,), jnp.float32)
        scale = (gamma / jnp.sqrt(running_var + bn_eps)).reshape(1, h)
        shift = beta.reshape(1, h) - running_mean.reshape(1, h) * scale
        params["hidden"].append(dict(w=w, b=b, scale=scale, shift=shift))
        input_dim = h

    key, kwm, kbm, kwv, kbv = jax.random.split(key, 5)
    bound = 1.0 / float(input_dim) ** 0.5
    params["wm"] = jax.random.uniform(kwm, (input_dim, latent_dim),
                                      jnp.float32, -bound, bound)
    params["bm"] = jax.random.uniform(kbm, (1, latent_dim),
                                      jnp.float32, -bound, bound)
    params["wv"] = jax.random.uniform(kwv, (input_dim, latent_dim),
                                      jnp.float32, -bound, bound)
    params["bv"] = jax.random.uniform(kbv, (1, latent_dim),
                                      jnp.float32, -bound, bound)
    return params


# ----------------------------------------------------------------------------
# One-time param prep: fold BN + bias into weights, pad widths to 128 lanes,
# concatenate the two latent heads, and cast weights to bf16.
# ----------------------------------------------------------------------------
def prepare_encoder_params(raw):
    hidden = []
    in_real = raw["input_dim"]
    in_pad = _round_up(in_real, _LANE)
    for layer in raw["hidden"]:
        w, b = layer["w"], layer["b"]
        scale, shift = layer["scale"], layer["shift"]
        h = w.shape[1]
        h_pad = _round_up(h, _LANE)
        w_fold = w * scale                 # fold BN scale into weight columns
        s_fold = b * scale + shift         # fold bias + BN shift
        w_p = jnp.zeros((in_pad, h_pad), jnp.float32)
        w_p = w_p.at[:in_real, :h].set(w_fold)
        s_p = jnp.zeros((1, h_pad), jnp.float32).at[:, :h].set(s_fold)
        hidden.append((w_p.astype(jnp.bfloat16), s_p))
        in_real, in_pad = h, h_pad

    latent = raw["wm"].shape[1]
    l_pad = _round_up(latent, _LANE)
    w_head = jnp.zeros((in_pad, 2 * l_pad), jnp.float32)
    w_head = w_head.at[:in_real, :latent].set(raw["wm"])
    w_head = w_head.at[:in_real, l_pad:l_pad + latent].set(raw["wv"])
    b_head = jnp.zeros((1, 2 * l_pad), jnp.float32)
    b_head = b_head.at[:, :latent].set(raw["bm"])
    b_head = b_head.at[:, l_pad:l_pad + latent].set(raw["bv"])
    return {"hidden": hidden,
            "w_head": w_head.astype(jnp.bfloat16),
            "b_head": b_head}


# ----------------------------------------------------------------------------
# Pure-JAX f32 reference (eval-mode PyTorch semantics) for the sanity check
# ----------------------------------------------------------------------------
def reference_forward(raw, x, eps):
    h = x.reshape(x.shape[0], -1)
    for layer in raw["hidden"]:
        y = h @ layer["w"] + layer["b"]
        y = y * layer["scale"] + layer["shift"]
        h = jnp.maximum(y, 0.0)
    zm = h @ raw["wm"] + raw["bm"]
    zv = h @ raw["wv"] + raw["bv"]
    z = zm + jnp.exp(0.5 * zv) * eps
    return zm, zv, z


if __name__ == "__main__":
    # Small shapes consistent with the module's forward signature.
    B = 8                  # batch
    n_features = 16
    num_classes = 4
    latent_dim = 8
    hidden_layer_sizes = [32, 16]

    key = jax.random.PRNGKey(0)
    kx, keps, kparams = jax.random.split(key, 3)

    x = jax.random.normal(kx, (B, n_features, num_classes), jnp.float32)
    # epsilon for the reparameterization trick (torch.randn_like equivalent)
    eps = jax.random.normal(keps, (B, latent_dim), jnp.float32)

    raw = init_encoder_params(kparams, n_features, num_classes,
                              latent_dim, hidden_layer_sizes)
    params = prepare_encoder_params(raw)

    z_mean, z_log_var, z = encoder_forward(params, x, eps,
                                           latent_dim=latent_dim)
    jax.block_until_ready((z_mean, z_log_var, z))

    # shape checks
    assert z_mean.shape == (B, latent_dim)
    assert z_log_var.shape == (B, latent_dim)
    assert z.shape == (B, latent_dim)

    # numerical sanity check vs. pure-JAX f32 reference (bf16 weights ->
    # slightly looser tolerance than a pure-f32 kernel).
    zm_r, zv_r, z_r = reference_forward(raw, x, eps)
    assert jnp.allclose(z_mean, zm_r, atol=5e-2, rtol=5e-2)
    assert jnp.allclose(z_log_var, zv_r, atol=5e-2, rtol=5e-2)
    assert jnp.allclose(z, z_r, atol=5e-2, rtol=5e-2)

    print("KERNEL_OK")
</pallas_src>

<mosaic_0001>
module attributes {stable_mosaic.version = 11 : i64} {
  func.func @kernel(%arg0: i32, %arg1: memref<16x128xbf16, #tpu.memory_space<vmem>>, %arg2: memref<128x128xbf16, #tpu.memory_space<vmem>>, %arg3: memref<1x128xf32, #tpu.memory_space<vmem>>, %arg4: memref<128x128xbf16, #tpu.memory_space<vmem>>, %arg5: memref<1x128xf32, #tpu.memory_space<vmem>>, %arg6: memref<128x256xbf16, #tpu.memory_space<vmem>>, %arg7: memref<1x256xf32, #tpu.memory_space<vmem>>, %arg8: memref<16x128xf32, #tpu.memory_space<vmem>>, %arg9: memref<16x128xf32, #tpu.memory_space<vmem>>, %arg10: memref<16x128xf32, #tpu.memory_space<vmem>>, %arg11: memref<16x128xf32, #tpu.memory_space<vmem>>) attributes {dimension_semantics = [#tpu.dimension_semantics<parallel>], iteration_bounds = array<i64: 1>, scalar_prefetch = 0 : i64, scratch_operands = 0 : i64, tpu.core_type = #tpu.core_type<tc>, window_params = [{transform_indices = @transform_0, window_bounds = array<i64: 16, 128>}, {pipeline_mode = #tpu.pipeline_mode<synchronous>, transform_indices = @transform_1, window_bounds = array<i64: 128, 128>}, {pipeline_mode = #tpu.pipeline_mode<synchronous>, transform_indices = @transform_2, window_bounds = array<i64: 1, 128>}, {pipeline_mode = #tpu.pipeline_mode<synchronous>, transform_indices = @transform_3, window_bounds = array<i64: 128, 128>}, {pipeline_mode = #tpu.pipeline_mode<synchronous>, transform_indices = @transform_4, window_bounds = array<i64: 1, 128>}, {pipeline_mode = #tpu.pipeline_mode<synchronous>, transform_indices = @transform_5, window_bounds = array<i64: 128, 256>}, {pipeline_mode = #tpu.pipeline_mode<synchronous>, transform_indices = @transform_6, window_bounds = array<i64: 1, 256>}, {transform_indices = @transform_7, window_bounds = array<i64: 16, 128>}, {transform_indices = @transform_8, window_bounds = array<i64: 16, 128>}, {transform_indices = @transform_9, window_bounds = array<i64: 16, 128>}, {transform_indices = @transform_10, window_bounds = array<i64: 16, 128>}]} {
    %c0 = arith.constant 0 : index
    %c0_0 = arith.constant 0 : index
    %0 = vector.load %arg1[%c0, %c0_0] : memref<16x128xbf16, #tpu.memory_space<vmem>>, vector<16x128xbf16>
    %c0_1 = arith.constant 0 : index
    %c0_2 = arith.constant 0 : index
    %1 = vector.load %arg2[%c0_1, %c0_2] : memref<128x128xbf16, #tpu.memory_space<vmem>>, vector<128x128xbf16>
    %cst = arith.constant dense<0.000000e+00> : vector<16x128xf32>
    %2 = tpu.matmul %0, %1, %cst {dimension_numbers = #tpu.dot_dimension_numbers<[1], [0], [0], [1], [0, 0, 1, 1], [], []>} : vector<16x128xbf16>, vector<128x128xbf16>, vector<16x128xf32> -> vector<16x128xf32>
    %c0_3 = arith.constant 0 : index
    %c0_4 = arith.constant 0 : index
    %3 = vector.load %arg3[%c0_3, %c0_4] : memref<1x128xf32, #tpu.memory_space<vmem>>, vector<1x128xf32>
    %4 = vector.broadcast %3 : vector<1x128xf32> to vector<16x128xf32>
    %5 = arith.addf %2, %4 : vector<16x128xf32>
    %cst_5 = arith.constant 0.000000e+00 : f32
    %6 = vector.broadcast %cst_5 : f32 to vector<16x128xf32>
    %7 = arith.maximumf %5, %6 : vector<16x128xf32>
    %8 = arith.truncf %7 : vector<16x128xf32> to vector<16x128xbf16>
    %c0_6 = arith.constant 0 : index
    %c0_7 = arith.constant 0 : index
    %9 = vector.load %arg4[%c0_6, %c0_7] : memref<128x128xbf16, #tpu.memory_space<vmem>>, vector<128x128xbf16>
    %cst_8 = arith.constant dense<0.000000e+00> : vector<16x128xf32>
    %10 = tpu.matmul %8, %9, %cst_8 {dimension_numbers = #tpu.dot_dimension_numbers<[1], [0], [0], [1], [0, 0, 1, 1], [], []>} : vector<16x128xbf16>, vector<128x128xbf16>, vector<16x128xf32> -> vector<16x128xf32>
    %c0_9 = arith.constant 0 : index
    %c0_10 = arith.constant 0 : index
    %11 = vector.load %arg5[%c0_9, %c0_10] : memref<1x128xf32, #tpu.memory_space<vmem>>, vector<1x128xf32>
    %12 = vector.broadcast %11 : vector<1x128xf32> to vector<16x128xf32>
    %13 = arith.addf %10, %12 : vector<16x128xf32>
    %cst_11 = arith.constant 0.000000e+00 : f32
    %14 = vector.broadcast %cst_11 : f32 to vector<16x128xf32>
    %15 = arith.maximumf %13, %14 : vector<16x128xf32>
    %16 = arith.truncf %15 : vector<16x128xf32> to vector<16x128xbf16>
    %c0_12 = arith.constant 0 : index
    %c0_13 = arith.constant 0 : index
    %17 = vector.load %arg6[%c0_12, %c0_13] : memref<128x256xbf16, #tpu.memory_space<vmem>>, vector<128x256xbf16>
    %cst_14 = arith.constant dense<0.000000e+00> : vector<16x256xf32>
    %18 = tpu.matmul %16, %17, %cst_14 {dimension_numbers = #tpu.dot_dimension_numbers<[1], [0], [0], [1], [0, 0, 1, 1], [], []>} : vector<16x128xbf16>, vector<128x256xbf16>, vector<16x256xf32> -> vector<16x256xf32>
    %c0_15 = arith.constant 0 : index
    %c0_16 = arith.constant 0 : index
    %19 = vector.load %arg7[%c0_15, %c0_16] : memref<1x256xf32, #tpu.memory_space<vmem>>, vector<1x256xf32>
    %20 = vector.broadcast %19 : vector<1x256xf32> to vector<16x256xf32>
    %21 = arith.addf %18, %20 : vector<16x256xf32>
    %22 = vector.extract_strided_slice %21 {offsets = [0, 0], sizes = [16, 128], strides = [1, 1]} : vector<16x256xf32> to vector<16x128xf32>
    %23 = vector.extract_strided_slice %21 {offsets = [0, 128], sizes = [16, 128], strides = [1, 1]} : vector<16x256xf32> to vector<16x128xf32>
    %c0_17 = arith.constant 0 : index
    %c0_18 = arith.constant 0 : index
    %24 = vector.load %arg9[%c0_17, %c0_18] : memref<16x128xf32, #tpu.memory_space<vmem>>, vector<16x128xf32>
    tpu.vector_store %arg9[%c0_17, %c0_18], %22 {strides = array<i32>} : memref<16x128xf32, #tpu.memory_space<vmem>>, vector<16x128xf32>,
    %c0_19 = arith.constant 0 : index
    %c0_20 = arith.constant 0 : index
    %25 = vector.load %arg10[%c0_19, %c0_20] : memref<16x128xf32, #tpu.memory_space<vmem>>, vector<16x128xf32>
    tpu.vector_store %arg10[%c0_19, %c0_20], %23 {strides = array<i32>} : memref<16x128xf32, #tpu.memory_space<vmem>>, vector<16x128xf32>,
    %cst_21 = arith.constant 5.000000e-01 : f32
    %26 = vector.broadcast %cst_21 : f32 to vector<16x128xf32>
    %27 = arith.mulf %26, %23 : vector<16x128xf32>
    %28 = math.exp %27 : vector<16x128xf32>
    %c0_22 = arith.constant 0 : index
    %c0_23 = arith.constant 0 : index
    %29 = vector.load %arg8[%c0_22, %c0_23] : memref<16x128xf32, #tpu.memory_space<vmem>>, vector<16x128xf32>
    %30 = arith.mulf %28, %29 : vector<16x128xf32>
    %31 = arith.addf %22, %30 : vector<16x128xf32>
    %c0_24 = arith.constant 0 : index
    %c0_25 = arith.constant 0 : index
    %32 = vector.load %arg11[%c0_24, %c0_25] : memref<16x128xf32, #tpu.memory_space<vmem>>, vector<16x128xf32>
    tpu.vector_store %arg11[%c0_24, %c0_25], %31 {strides = array<i32>} : memref<16x128xf32, #tpu.memory_space<vmem>>, vector<16x128xf32>,
    return
  }
  func.func @transform_0(%arg0: i32) -> (i32, i32) {
    %c0_i32 = arith.constant 0 : i32
    %c0_i32_0 = arith.constant 0 : i32
    return %arg0, %c0_i32 : i32, i32
  }
  func.func @transform_1(%arg0: i32) -> (i32, i32) {
    %c0_i32 = arith.constant 0 : i32
    %c0_i32_0 = arith.constant 0 : i32
    %c0_i32_1 = arith.constant 0 : i32
    return %c0_i32, %c0_i32_0 : i32, i32
  }
  func.func @transform_2(%arg0: i32) -> (i32, i32) {
    %c0_i32 = arith.constant 0 : i32
    %c0_i32_0 = arith.constant 0 : i32
    %c0_i32_1 = arith.constant 0 : i32
    return %c0_i32, %c0_i32_0 : i32, i32
  }
  func.func @transform_3(%arg0: i32) -> (i32, i32) {
    %c0_i32 = arith.constant 0 : i32
    %c0_i32_0 = arith.constant 0 : i32
    %c0_i32_1 = arith.constant 0 : i32
    return %c0_i32, %c0_i32_0 : i32, i32
  }
  func.func @transform_4(%arg0: i32) -> (i32, i32) {
    %c0_i32 = arith.constant 0 : i32
    %c0_i32_0 = arith.constant 0 : i32
    %c0_i32_1 = arith.constant 0 : i32
    return %c0_i32, %c0_i32_0 : i32, i32
  }
  func.func @transform_5(%arg0: i32) -> (i32, i32) {
    %c0_i32 = arith.constant 0 : i32
    %c0_i32_0 = arith.constant 0 : i32
    %c0_i32_1 = arith.constant 0 : i32
    return %c0_i32, %c0_i32_0 : i32, i32
  }
  func.func @transform_6(%arg0: i32) -> (i32, i32) {
    %c0_i32 = arith.constant 0 : i32
    %c0_i32_0 = arith.constant 0 : i32
    %c0_i32_1 = arith.constant 0 : i32
    return %c0_i32, %c0_i32_0 : i32, i32
  }
  func.func @transform_7(%arg0: i32) -> (i32, i32) {
    %c0_i32 = arith.constant 0 : i32
    %c0_i32_0 = arith.constant 0 : i32
    return %arg0, %c0_i32 : i32, i32
  }
  func.func @transform_8(%arg0: i32) -> (i32, i32) {
    %c0_i32 = arith.constant 0 : i32
    %c0_i32_0 = arith.constant 0 : i32
    return %arg0, %c0_i32 : i32, i32
  }
  func.func @transform_9(%arg0: i32) -> (i32, i32) {
    %c0_i32 = arith.constant 0 : i32
    %c0_i32_0 = arith.constant 0 : i32
    return %arg0, %c0_i32 : i32, i32
  }
  func.func @transform_10(%arg0: i32) -> (i32, i32) {
    %c0_i32 = arith.constant 0 : i32
    %c0_i32_0 = arith.constant 0 : i32
    return %arg0, %c0_i32 : i32, i32
  }
}

</mosaic_0001>

<bundles_post_ra>
// kernel: encoder_forward.1
= control target key start
LH: loop header
LB: loop body
LE: loop exit
PB: predicated region body
PF: predicated region fallthrough
CT: control target
= control target key end

     0   :  { %16 = vsyncpa [#allocation3], 0  ;;  %s823_s0 = inlined_call_operand.vmem [shape: bf16[16,128], index: 0, kind: input, shape index: {}]   ;;  %s824_s1 = inlined_call_operand.hbm [shape: bf16[128,128], index: 1, kind: input, shape index: {}]   ;;  %s825_s2 = inlined_call_operand.vmem [shape: f32[1,128], index: 2, kind: input, shape index: {}]   ;;  %s826_s3 = inlined_call_operand.hbm [shape: bf16[128,128], index: 3, kind: input, shape index: {}]   ;;  %s827_s4 = inlined_call_operand.vmem [shape: f32[1,128], index: 4, kind: input, shape index: {}]   ;;  %s828_s5 = inlined_call_operand.vmem [shape: bf16[128,256], index: 5, kind: input, shape index: {}]   ;;  %s829_s6 = inlined_call_operand.vmem [shape: f32[1,256], index: 6, kind: input, shape index: {}]   ;;  %s830_s7 = inlined_call_operand.vmem [shape: f32[16,128], index: 7, kind: input, shape index: {}]   ;;  %s831_s8 = inlined_call_operand.vmem [shape: f32[16,128], index: 8, kind: output, shape index: {0}]   ;;  %s832_s9 = inlined_call_operand.vmem [shape: f32[16,128], index: 9, kind: output, shape index: {1}]   ;;  %s833_s10 = inlined_call_operand.vmem [shape: f32[16,128], index: 10, kind: output, shape index: {2}]  }
   0x1   :  { %17 = vsyncpa [#allocation5], 0  ;;  %s671_s13 = smov [#allocation2]  }
   0x2   :  { %s25_s14 = sshll.u32 %s671_s13, 4  ;;  %s26_s14 = int_to_ptr.vmem [resolvable:$true] %s25_s14 }
   0x3   :  { %s635_s15 = scalar_lea.vmem %s26_s14, 1024  ;;  %p640_p1 = scmp.lt.s32.totalorder %s26_s14, %s26_s14 }
   0x4   :  { %p636_p0 = scmp.ne.s32.totalorder %s26_s14, %s635_s15  ;;  %p641_p2 = scmp.lt.s32.totalorder %s635_s15, %s635_s15 }
   0x6   :  { %p642_p3 = por %p641_p2, %p640_p1 }
   0x8   :  { %p643_p4 = pnand %p642_p3, %p636_p0 }
   0xa   :  { %646 = shalt.err (!%p643_p4)
}
   0xb   :  { %s672_s16 = smov 64   ;;  %s673_s17 = smov 4  }
   0xc   :  { %31 = dma.hbm_to_vmem [thread:$0]  %s824_s1, 1024, %s26_s14, [#allocation3], %s672_s16, %s672_s16, %s673_s17  }
   0xd   :  { %s674_s20 = smov [#allocation4]  }
   0xe   :  { %s39_s21 = sshll.u32 %s674_s20, 4  ;;  %s40_s21 = int_to_ptr.vmem [resolvable:$true] %s39_s21 }
   0xf   :  { %s655_s22 = scalar_lea.vmem %s40_s21, 1024  ;;  %p660_p6 = scmp.lt.s32.totalorder %s40_s21, %s40_s21 }
  0x10   :  { %p656_p5 = scmp.ne.s32.totalorder %s40_s21, %s655_s22  ;;  %p661_p7 = scmp.lt.s32.totalorder %s655_s22, %s655_s22 }
  0x12   :  { %p662_p8 = por %p661_p7, %p660_p6 }
  0x14   :  { %p663_p9 = pnand %p662_p8, %p656_p5 }
  0x16   :  { %666 = shalt.err (!%p663_p9)
}
  0x17   :  { %45 = dma.hbm_to_vmem [thread:$0]  %s826_s3, 1024, %s40_s21, [#allocation5], %s672_s16, %s672_s16, %s673_s17  }
  0x18   :  { %667 = dma.done.wait [#allocation3], 1024  }
  0x19   :  { %668 = vsyncadd [#allocation3], 4294966272 }
  0x1a   :  { %669 = dma.done.wait [#allocation5], 1024  }
  0x1b   :  { %670 = vsyncadd [#allocation5], 4294966272  ;;  %v675_v0 = vmov 0.0   ;;  %vm676_vm0 = vmmov 0   ;;  %v582_v1 = vld [vmem:[#allocation2 + $0x38] sm:$0xff]   ;;  %v583_v2 = vld [vmem:[#allocation2 + $0x30] sm:$0xff]   ;;  %v317_v55 = vlaneseq }
  0x1c   :  { %535 = vmatprep.subr.bf16.mxu0 %v675_v0  ;;  %551 = vmatprep.mubr.msk.bf16.mxu0 %vm676_vm0, %v675_v0  ;;  %v584_v3 = vld [vmem:[#allocation2 + $0x28] sm:$0xff]   ;;  %v591_v4 = vld [vmem:[#allocation4 + $0x38] sm:$0xff]   ;;  %v585_v5 = vld [vmem:[#allocation2 + $0x20] sm:$0xff]   ;;  %v677_v44 = vmov 0  }
  0x1d   :  { %555 = vmatprep.subr.bf16.mxu1 %v675_v0  ;;  %571 = vmatprep.mubr.msk.bf16.mxu1 %vm676_vm0, %v675_v0  ;;  %v592_v6 = vld [vmem:[#allocation4 + $0x30] sm:$0xff]   ;;  %v586_v7 = vld [vmem:[#allocation2 + $0x18] sm:$0xff]   ;;  %v593_v8 = vld [vmem:[#allocation4 + $0x28] sm:$0xff]   ;;  %v318_v56 = vshrl.u32 %v317_v55, 7 }
  0x1e   :  { %536 = vmatpush3.bf16.msra.mxu0 %v582_v1  ;;  %556 = vmatpush3.bf16.msra.mxu1 %v591_v4  ;;  %v587_v9 = vld [vmem:[#allocation2 + $0x10] sm:$0xff]   ;;  %v594_v10 = vld [vmem:[#allocation4 + $0x20] sm:$0xff]   ;;  %v588_v11 = vld [vmem:[#allocation2 + $0x8] sm:$0xff]  }
  0x1f   :  { %537 = vmatprep.subr.bf16.mxu0 %v675_v0  ;;  %557 = vmatprep.subr.bf16.mxu1 %v675_v0  ;;  %v595_v12 = vld [vmem:[#allocation4 + $0x18] sm:$0xff]   ;;  %v589_v13 = vld [vmem:[#allocation2] sm:$0xff]   ;;  %v596_v15 = vld [vmem:[#allocation4 + $0x10] sm:$0xff]   ;;  %v319_v57 = vsub.s32 0, %v318_v56  ;;  %v323_v59 = vsub.s32 1, %v318_v56 }
  0x20   :  { %v590_v14 = vld [vmem:[%s823_s0] sm:$0xff]   ;;  %v597_v16 = vld [vmem:[#allocation4 + $0x8] sm:$0xff]   ;;  %v599_v18 = vld [vmem:[%s828_s5 + $0x70] ss:$8 sps:$4 sm:$0xff]  }
  0x21   :  { %v598_v17 = vld [vmem:[#allocation4] sm:$0xff]   ;;  %v601_v19 = vld [vmem:[%s828_s5 + $0x74] ss:$8 sps:$4 sm:$0xff]   ;;  %v605_v23 = vld [vmem:[%s828_s5 + $0x50] ss:$8 sps:$4 sm:$0xff]  }
  0x22   :  { %538 = vmatpush3.bf16.msra.mxu0 %v583_v2  ;;  %558 = vmatpush3.bf16.msra.mxu1 %v592_v6  ;;  %v604_v20 = vld [vmem:[%s828_s5 + $0x64] ss:$8 sps:$4 sm:$0xff]   ;;  %v602_v21 = vld [vmem:[%s828_s5 + $0x60] ss:$8 sps:$4 sm:$0xff]   ;;  %v607_v22 = vld [vmem:[%s828_s5 + $0x54] ss:$8 sps:$4 sm:$0xff]  }
  0x23   :  { %539 = vmatprep.subr.bf16.mxu0 %v675_v0  ;;  %559 = vmatprep.subr.bf16.mxu1 %v675_v0  ;;  %v610_v24 = vld [vmem:[%s828_s5 + $0x44] ss:$8 sps:$4 sm:$0xff]   ;;  %v608_v25 = vld [vmem:[%s828_s5 + $0x40] ss:$8 sps:$4 sm:$0xff]   ;;  %v613_v26 = vld [vmem:[%s828_s5 + $0x34] ss:$8 sps:$4 sm:$0xff]  }
  0x24   :  { %v611_v27 = vld [vmem:[%s828_s5 + $0x30] ss:$8 sps:$4 sm:$0xff]   ;;  %v616_v28 = vld [vmem:[%s828_s5 + $0x24] ss:$8 sps:$4 sm:$0xff]   ;;  %v614_v29 = vld [vmem:[%s828_s5 + $0x20] ss:$8 sps:$4 sm:$0xff]  }
  0x25   :  { %v482_v30 = vld [vmem:[%s825_s2] ss:$0 sm:$0xff]  ;;  %v619_v40 = vld [vmem:[%s828_s5 + $0x14] ss:$8 sps:$4 sm:$0xff]   ;;  %v617_v41 = vld [vmem:[%s828_s5 + $0x10] ss:$8 sps:$4 sm:$0xff]  }
  0x26   :  { %540 = vmatpush3.bf16.msra.mxu0 %v584_v3  ;;  %560 = vmatpush3.bf16.msra.mxu1 %v593_v8  ;;  %v622_v42 = vld [vmem:[%s828_s5 + $0x4] ss:$8 sps:$4 sm:$0xff]   ;;  %v620_v43 = vld [vmem:[%s828_s5] ss:$8 sps:$4 sm:$0xff]  }
  0x27   :  { %541 = vmatprep.subr.bf16.mxu0 %v675_v0  ;;  %561 = vmatprep.subr.bf16.mxu1 %v675_v0  ;;  %v492_v45 = vld [vmem:[%s827_s4] ss:$0 sm:$0xff] }
  0x28   :  { %v315_v58 = vld [vmem:[%s829_s6] sm:$0x3] }
  0x29   :  { %v320_v60 = vrot.slane %v315_v58, %v319_v57  ;;  %v324_v61 = vrot.slane %v315_v58, %v323_v59 }
  0x2a   :  { %542 = vmatpush3.bf16.msra.mxu0 %v585_v5  ;;  %562 = vmatpush3.bf16.msra.mxu1 %v594_v10  ;;  %v460_v10 = vld [vmem:[%s830_s7] sm:$0xff] }
  0x2b   :  { %543 = vmatprep.subr.bf16.mxu0 %v675_v0  ;;  %563 = vmatprep.subr.bf16.mxu1 %v675_v0 }
  0x2e   :  { %544 = vmatpush3.bf16.msra.mxu0 %v586_v7  ;;  %564 = vmatpush3.bf16.msra.mxu1 %v595_v12 }
  0x2f   :  { %545 = vmatprep.subr.bf16.mxu0 %v675_v0  ;;  %565 = vmatprep.subr.bf16.mxu1 %v675_v0 }
  0x32   :  { %546 = vmatpush3.bf16.msra.mxu0 %v587_v9  ;;  %566 = vmatpush3.bf16.msra.mxu1 %v596_v15 }
  0x33   :  { %547 = vmatprep.subr.bf16.mxu0 %v675_v0  ;;  %567 = vmatprep.subr.bf16.mxu1 %v675_v0 }
  0x36   :  { %548 = vmatpush3.bf16.msra.mxu0 %v588_v11  ;;  %568 = vmatpush3.bf16.msra.mxu1 %v597_v16 }
  0x37   :  { %549 = vmatprep.subr.bf16.mxu0 %v675_v0  ;;  %569 = vmatprep.subr.bf16.mxu1 %v675_v0 }
  0x3a   :  { %550 = vmatpush3.bf16.msra.mxu0 %v589_v13  ;;  %570 = vmatpush3.bf16.msra.mxu1 %v598_v17  ;;  %v461_v13 = vld [vmem:[%s830_s7 + $0x8] sm:$0xff] }
  0x3b   :  { %407 = vmatprep.subr.bf16.mxu0 %v601_v19 }
  0x3d   :  { %552 = vmatmul.mubr.bf16.vlgmr.msra.gmra.mxu0 %v590_v14 }
  0x3e   :  { %408 = vmatpush1.bf16.msra.mxu0 %v599_v18  ;;  %439 = vmatprep.mubr.bf16.mxu0 %v677_v44 }
  0x3f   :  { %409 = vmatprep.subr.bf16.mxu0 %v604_v20 }
  0x42   :  { %410 = vmatpush1.bf16.msra.mxu0 %v602_v21 }
  0x43   :  { %411 = vmatprep.subr.bf16.mxu0 %v607_v22 }
  0x46   :  { %412 = vmatpush1.bf16.msra.mxu0 %v605_v23 }
  0x47   :  { %413 = vmatprep.subr.bf16.mxu0 %v610_v24 }
  0x4a   :  { %414 = vmatpush1.bf16.msra.mxu0 %v608_v25 }
  0x4b   :  { %415 = vmatprep.subr.bf16.mxu0 %v613_v26 }
  0x4e   :  { %416 = vmatpush1.bf16.msra.mxu0 %v611_v27 }
  0x4f   :  { %417 = vmatprep.subr.bf16.mxu0 %v616_v28 }
  0x52   :  { %418 = vmatpush1.bf16.msra.mxu0 %v614_v29 }
  0x53   :  { %419 = vmatprep.subr.bf16.mxu0 %v619_v40 }
  0x56   :  { %420 = vmatpush1.bf16.msra.mxu0 %v617_v41 }
  0x57   :  { %421 = vmatprep.subr.bf16.mxu0 %v622_v42 }
  0x5a   :  { %422 = vmatpush1.bf16.msra.mxu0 %v620_v43 }
  0xfd   :  { %v174_v31 = vpop.f32.mrf.mxu0 }
  0xfe   :  { %v175_v33 = vadd.f32 %v482_v30, %v174_v31 }
  0xff   :  { %v553_v32 = vpop.f32.mrf.mxu0 }
 0x100   :  { %v181_v37 = vmax.f32 %v175_v33, 0.0 }
 0x101   :  { %v177_v34 = vpop.f32.mrf.mxu0 }
 0x102   :  { %v178_v35 = vadd.f32 %v482_v30, %v177_v34 }
 0x103   :  { %v554_v36 = vpop.f32.mrf.mxu0 }
 0x104   :  { %v182_v38 = vmax.f32 %v178_v35, 0.0 }
 0x106   :  { %v183_v39 = vpack.c.bf16 %v182_v38, %v181_v37 }
 0x108   :  { %572 = vmatmul.mubr.bf16.vlgmr.msra.gmra.mxu1 %v183_v39 }
 0x1c8   :  { %v289_v46 = vpop.f32.mrf.mxu1 }
 0x1c9   :  { %v290_v48 = vadd.f32 %v492_v45, %v289_v46 }
 0x1ca   :  { %v573_v47 = vpop.f32.mrf.mxu1 }
 0x1cb   :  { %v296_v52 = vmax.f32 %v290_v48, 0.0 }
 0x1cc   :  { %v292_v49 = vpop.f32.mrf.mxu1 }
 0x1cd   :  { %v293_v50 = vadd.f32 %v492_v45, %v292_v49 }
 0x1ce   :  { %v574_v51 = vpop.f32.mrf.mxu1 }
 0x1cf   :  { %v297_v53 = vmax.f32 %v293_v50, 0.0 }
 0x1d1   :  { %v298_v54 = vpack.c.bf16 %v297_v53, %v296_v52 }
 0x1d3   :  { %440 = vmatmul.mubr.bf16.vlgmr.msra.gmra.mxu0 %v298_v54 }
 0x293   :  { %v441_v62 = vpop.f32.mrf.mxu0 }
 0x294   :  { %v442_v63 = vadd.f32 %v441_v62, %v320_v60 }
 0x295   :  { %v443_v0 = vpop.f32.mrf.mxu0 }
 0x296   :  { %450 = vst [vmem:[%s831_s8] sm:$0xff] %v442_v63  ;;  %v444_v1 = vadd.f32 %v443_v0, %v324_v61 }
 0x297   :  { %v445_v2 = vpop.f32.mrf.mxu0 }
 0x298   :  { %452 = vst [vmem:[%s832_s9] sm:$0xff] %v444_v1  ;;  %v454_v3 = vmul.f32 0.5, %v444_v1  ;;  %v446_v4 = vadd.f32 %v445_v2, %v320_v60 }
 0x299   :  { %v447_v5 = vpop.f32.mrf.mxu0 }
 0x29a   :  { %v456_v6 = vmul.f32 1.442695, %v454_v3  ;;  %451 = vst [vmem:[%s831_s8 + $0x8] sm:$0xff] %v446_v4  ;;  %v448_v7 = vadd.f32 %v447_v5, %v324_v61 }
 0x29c   :  { %623 = vpow2.f32 %v456_v6  ;;  %453 = vst [vmem:[%s832_s9 + $0x8] sm:$0xff] %v448_v7  ;;  %v455_v8 = vmul.f32 0.5, %v448_v7 }
 0x29e   :  { %v458_v9 = vmul.f32 1.442695, %v455_v8 }
 0x2a0   :  { %625 = vpow2.f32 %v458_v9 }
 0x2a9   :  { %v624_v11 = vpop.eup %623 }
 0x2aa   :  { %v462_v12 = vmul.f32 %v624_v11, %v460_v10 }
 0x2ac   :  { %v464_v14 = vadd.f32 %v462_v12, %v442_v63 }
 0x2ad   :  { %v626_v15 = vpop.eup %625 }
 0x2ae   :  { %466 = vst [vmem:[%s833_s10] sm:$0xff] %v464_v14  ;;  %v463_v16 = vmul.f32 %v626_v15, %v461_v13 }
 0x2b0   :  { %v465_v17 = vadd.f32 %v463_v16, %v446_v4 }
 0x2b2   :  { %467 = vst [vmem:[%s833_s10 + $0x8] sm:$0xff] %v465_v17 }
 0x2b3   :  { %480 = vsyncpa [#allocation3], 1 }
 0x2b4   :  { %481 = vsyncpa [#allocation5], 1 }

</bundles_post_ra>
